<compile_context>
chip_gen: v5e
topology: v5e:2x2
jax: 0.10.0
libtpu: 0.0.40
codegen_flags: <defaults>
</compile_context>

<pallas_src>
import jax
import jax.numpy as jnp
from jax.experimental import pallas as pl
from jax.experimental.pallas import tpu as pltpu


_VMEM_LIMIT = 32 * 1024 * 1024  # explicit scoped-VMEM budget, safe on v5e/v6e/v7x


# ---------------------------------------------------------------------------
# tiling helper
# ---------------------------------------------------------------------------
def _pick_tm(M, cap=1024, min_grid=2):
    """Lane tile for the M (= N*H*W) axis.

    Prefer the largest multiple of 128 that divides M and still yields >= min_grid
    grid steps (v7x has 2 TensorCores); otherwise the largest 128-multiple divisor;
    otherwise the full (small) M, which is a legal 'full dim' block.
    """
    divisors = [t for t in range(128, min(M, cap) + 1, 128) if M % t == 0]
    if not divisors:
        return M
    good = [t for t in divisors if M // t >= min_grid]
    return max(good) if good else max(divisors)


# ---------------------------------------------------------------------------
# Pallas kernels
# ---------------------------------------------------------------------------
def _conv_gemm_stats_kernel(w_ref, p_ref, y_ref, s_ref, q_ref):
    """y = W @ P (bf16 x bf16 -> f32 acc), plus fused per-channel sum / sumsq (BN stats)."""
    @pl.when(pl.program_id(0) == 0)
    def _():
        s_ref[...] = jnp.zeros_like(s_ref)
        q_ref[...] = jnp.zeros_like(q_ref)

    acc = jnp.dot(w_ref[...], p_ref[...], preferred_element_type=jnp.float32)
    y_ref[...] = acc.astype(y_ref.dtype)
    s_ref[...] += jnp.sum(acc, axis=1, keepdims=True)
    q_ref[...] += jnp.sum(acc * acc, axis=1, keepdims=True)


def conv_gemm_stats(w, p, out_dtype=jnp.bfloat16):
    """(Cout, K) @ (K, M) lane-dense GEMM with fused BN batch statistics."""
    Co, K = w.shape
    K2, M = p.shape
    assert K == K2
    tm = _pick_tm(M)
    return pl.pallas_call(
        _conv_gemm_stats_kernel,
        out_shape=(
            jax.ShapeDtypeStruct((Co, M), out_dtype),
            jax.ShapeDtypeStruct((Co, 1), jnp.float32),
            jax.ShapeDtypeStruct((Co, 1), jnp.float32),
        ),
        grid_spec=pltpu.PrefetchScalarGridSpec(
            num_scalar_prefetch=0,
            grid=(M // tm,),
            in_specs=[
                pl.BlockSpec((Co, K), lambda i: (0, 0)),   # weights stay resident
                pl.BlockSpec((K, tm), lambda i: (0, i)),   # stream patches along lanes
            ],
            out_specs=(
                pl.BlockSpec((Co, tm), lambda i: (0, i)),  # lane-dense output tile
                pl.BlockSpec((Co, 1), lambda i: (0, 0)),   # resident stats accumulators
                pl.BlockSpec((Co, 1), lambda i: (0, 0)),
            ),
        ),
        compiler_params=pltpu.CompilerParams(
            # stats accumulate across the M grid axis -> must run sequentially
            dimension_semantics=("arbitrary",),
            vmem_limit_bytes=_VMEM_LIMIT,
        ),
    )(w.astype(jnp.bfloat16), p.astype(jnp.bfloat16))


def _gemm_bias_kernel(w_ref, p_ref, b_ref, y_ref):
    acc = jnp.dot(w_ref[...], p_ref[...], preferred_element_type=jnp.float32)
    y_ref[...] = (acc + b_ref[...]).astype(y_ref.dtype)


def gemm_bias(w, p, b, out_dtype=jnp.bfloat16):
    """(Co, K) @ (K, M) + bias (per output row), lane-dense output."""
    Co, K = w.shape
    K2, M = p.shape
    assert K == K2
    tm = _pick_tm(M)
    return pl.pallas_call(
        _gemm_bias_kernel,
        out_shape=jax.ShapeDtypeStruct((Co, M), out_dtype),
        grid_spec=pltpu.PrefetchScalarGridSpec(
            num_scalar_prefetch=0,
            grid=(M // tm,),
            in_specs=[
                pl.BlockSpec((Co, K), lambda i: (0, 0)),
                pl.BlockSpec((K, tm), lambda i: (0, i)),
                pl.BlockSpec((Co, 1), lambda i: (0, 0)),
            ],
            out_specs=pl.BlockSpec((Co, tm), lambda i: (0, i)),
        ),
        compiler_params=pltpu.CompilerParams(
            dimension_semantics=("parallel",),
            vmem_limit_bytes=_VMEM_LIMIT,
        ),
    )(w.astype(jnp.bfloat16), p.astype(jnp.bfloat16),
      b.reshape(Co, 1).astype(jnp.float32))


def _bn_relu_kernel(y_ref, sc_ref, sh_ref, o_ref):
    y = y_ref[...].astype(jnp.float32)          # f32 elementwise math (v5e-safe)
    o_ref[...] = jnp.maximum(y * sc_ref[...] + sh_ref[...], 0.0).astype(o_ref.dtype)


def bn_relu(y, scale, shift, out_dtype=jnp.bfloat16):
    Co, M = y.shape
    tm = _pick_tm(M)
    return pl.pallas_call(
        _bn_relu_kernel,
        out_shape=jax.ShapeDtypeStruct((Co, M), out_dtype),
        grid_spec=pltpu.PrefetchScalarGridSpec(
            num_scalar_prefetch=0,
            grid=(M // tm,),
            in_specs=[
                pl.BlockSpec((Co, tm), lambda i: (0, i)),
                pl.BlockSpec((Co, 1), lambda i: (0, 0)),
                pl.BlockSpec((Co, 1), lambda i: (0, 0)),
            ],
            out_specs=pl.BlockSpec((Co, tm), lambda i: (0, i)),
        ),
        compiler_params=pltpu.CompilerParams(
            dimension_semantics=("parallel",),
            vmem_limit_bytes=_VMEM_LIMIT,
        ),
    )(y, scale.astype(jnp.float32), shift.astype(jnp.float32))


def _max4_kernel(t_ref, o_ref):
    a = jnp.maximum(t_ref[0].astype(jnp.float32), t_ref[1].astype(jnp.float32))
    b = jnp.maximum(t_ref[2].astype(jnp.float32), t_ref[3].astype(jnp.float32))
    o_ref[...] = jnp.maximum(a, b).astype(o_ref.dtype)


def maxpool2x2(z, N, H, W):
    """MaxPool2d(k=2, s=2). z: (C, N*H*W) channel-first; returns (C, N*Ho*Wo)."""
    C, M = z.shape
    Ho, Wo = H // 2, W // 2
    Mo = N * Ho * Wo
    # gather the 4 window taps (cheap relayout glue), keep M on lanes in the kernel
    taps = (
        z.reshape(C, N, Ho, 2, Wo, 2)
        .transpose(3, 5, 0, 1, 2, 4)
        .reshape(4, C, Mo)
    )
    tm = _pick_tm(Mo)
    return pl.pallas_call(
        _max4_kernel,
        out_shape=jax.ShapeDtypeStruct((C, Mo), z.dtype),
        grid_spec=pltpu.PrefetchScalarGridSpec(
            num_scalar_prefetch=0,
            grid=(Mo // tm,),
            in_specs=[pl.BlockSpec((4, C, tm), lambda i: (0, 0, i))],
            out_specs=pl.BlockSpec((C, tm), lambda i: (0, i)),
        ),
        compiler_params=pltpu.CompilerParams(
            dimension_semantics=("parallel",),
            vmem_limit_bytes=_VMEM_LIMIT,
        ),
    )(taps)


# ---------------------------------------------------------------------------
# layer wrappers (JAX glue around the Pallas kernels)
# ---------------------------------------------------------------------------
def conv3x3_bn_relu(x, shape_nhw, w, gamma, beta, eps=1e-5):
    """Conv2d(k=3, s=1, p=1, bias=False) + BatchNorm2d (training-mode batch stats) + ReLU.

    x: (Cin, M) channel-first with M = N*H*W; w: PyTorch layout (Cout, Cin, 3, 3).
    """
    N, H, W = shape_nhw
    Cin, M = x.shape
    Cout = w.shape[0]

    # im2col, transposed: rows = (cin, kh, kw), cols = flattened output pixels (on lanes).
    # Built in bf16 to halve the blow-up traffic.
    # TODO(synk): stream the 9 taps from HBM inside the GEMM (manual DMA of shifted
    # windows) instead of materializing the (K, M) patch matrix.
    xp = jnp.pad(x.reshape(Cin, N, H, W), ((0, 0), (0, 0), (1, 1), (1, 1)))
    taps = [xp[:, :, kh:kh + H, kw:kw + W] for kh in range(3) for kw in range(3)]
    p = jnp.stack(taps, axis=1).reshape(Cin * 9, M).astype(jnp.bfloat16)
    wm = w.reshape(Cout, Cin * 9)                     # cols ordered (cin, kh, kw) -> matches p

    y, s, q = conv_gemm_stats(wm, p)                  # conv output + fused BN batch stats

    m = float(M)
    mean = s / m
    var = jnp.maximum(q / m - mean * mean, 0.0)       # clamp cancellation
    scale = gamma.reshape(Cout, 1) / jnp.sqrt(var + eps)
    shift = beta.reshape(Cout, 1) - mean * scale
    return bn_relu(y, scale, shift)


def convtranspose2x2(x, shape_nhw, w, b):
    """ConvTranspose2d(kernel_size=2, stride=2).

    x: (Cin, M); w: PyTorch layout (Cin, Cout, 2, 2); b: (Cout,).
    Returns (Cout, N*2H*2W) and the new (N, 2H, 2W) shape.
    """
    N, H, W = shape_nhw
    Cin, M = x.shape
    Cout = w.shape[1]
    wm = jnp.transpose(w, (2, 3, 1, 0)).reshape(4 * Cout, Cin)   # rows = (kh, kw, cout)
    bias = jnp.tile(b, 4)                                        # matches (kh, kw, cout)
    u = gemm_bias(wm, x, bias)                                   # (4*Cout, M), lane-dense
    u = (
        u.reshape(2, 2, Cout, N, H, W)
        .transpose(2, 3, 4, 0, 5, 1)                             # -> (Cout, N, H, kh, W, kw)
        .reshape(Cout, N * 2 * H * 2 * W)
    )
    return u, (N, 2 * H, 2 * W)


def tf_resize(x, shape_nhw, target_nhw):
    """torchvision TF.resize. In this U-Net spatial sizes already match (no-op)."""
    if tuple(shape_nhw) == tuple(target_nhw):
        return x, shape_nhw
    C = x.shape[0]
    N, H, W = shape_nhw
    _, Ht, Wt = target_nhw
    img = jax.image.resize(x.reshape(C, N, H, W).astype(jnp.float32),
                           (C, N, Ht, Wt), method="bilinear")
    # TODO(synk): torchvision bilinear+antialias semantics not replicated exactly.
    return img.reshape(C, N * Ht * Wt).astype(x.dtype), target_nhw


# ---------------------------------------------------------------------------
# U-Net (parameters initialized deterministically in-script)
# ---------------------------------------------------------------------------
class UnetPallas:
    def __init__(self, features, in_feature, out_feature, key):
        self.features = list(features)
        keys = iter(jax.random.split(key, 128))

        def conv_w(k, cout, cin, kh, kw):
            fan_in = cin * kh * kw
            return jax.random.normal(k, (cout, cin, kh, kw), jnp.float32) / jnp.sqrt(
                float(fan_in)
            )

        def convblock_params(cin, cout):
            return (
                conv_w(next(keys), cout, cin, 3, 3),
                jnp.ones((cout,), jnp.float32),   # BN gamma (default init)
                jnp.zeros((cout,), jnp.float32),  # BN beta  (default init)
                conv_w(next(keys), cout, cout, 3, 3),
                jnp.ones((cout,), jnp.float32),
                jnp.zeros((cout,), jnp.float32),
            )

        self.downs = []
        cin = in_feature
        for f in self.features:
            self.downs.append(convblock_params(cin, f))
            cin = f

        self.convups = []
        self.ups = []
        for f in reversed(self.features[1:]):
            wt = jax.random.normal(
                next(keys), (f, f // 2, 2, 2), jnp.float32
            ) / jnp.sqrt(float(f * 4))
            bt = 0.01 * jax.random.normal(next(keys), (f // 2,), jnp.float32)
            self.convups.append((wt, bt))
            self.ups.append(convblock_params(f, f // 2))

        wf = conv_w(next(keys), out_feature, self.features[0], 1, 1)
        bf = 0.01 * jax.random.normal(next(keys), (out_feature,), jnp.float32)
        self.finallayer = (wf, bf)

    @staticmethod
    def _convblock(params, x, shape_nhw):
        w1, g1, b1, w2, g2, b2 = params
        x = conv3x3_bn_relu(x, shape_nhw, w1, g1, b1)
        x = conv3x3_bn_relu(x, shape_nhw, w2, g2, b2)
        return x

    def __call__(self, x_nchw):
        N, Cin, H, W = x_nchw.shape
        # internal layout: channel-first (C, N*H*W), spatial pixels on lanes, bf16 storage
        x = jnp.transpose(x_nchw, (1, 0, 2, 3)).reshape(Cin, N * H * W).astype(jnp.bfloat16)
        shape = (N, H, W)

        skips = []
        out = x
        for params in self.downs[:-1]:
            out = self._convblock(params, out, shape)
            skips.append((out, shape))
            out = maxpool2x2(out, *shape)
            shape = (shape[0], shape[1] // 2, shape[2] // 2)
        out = self._convblock(self.downs[-1], out, shape)

        skips_rev = skips[::-1]
        s = 0
        c_out, c_shape = None, None
        for i in range(len(self.ups) * 2):
            if i % 2 == 0:
                wt, bt = self.convups[i // 2]
                out, shape = convtranspose2x2(out, shape, wt, bt)
                skip, skip_shape = skips_rev[i // 2]
                out, shape = tf_resize(out, shape, skip_shape)
                c_out = jnp.concatenate([skip, out], axis=0)   # cat along channels
                c_shape = skip_shape
            else:
                out = self._convblock(self.ups[s], c_out, c_shape)
                shape = c_shape
                s += 1

        wf, bf = self.finallayer
        Cout = wf.shape[0]
        y = gemm_bias(wf.reshape(Cout, -1), out, bf, out_dtype=jnp.float32)  # (Cout, M)
        Nf, Hf, Wf = shape
        y = y.reshape(Cout, Nf, Hf, Wf).transpose(1, 0, 2, 3)                # -> NCHW
        return y


# ---------------------------------------------------------------------------
if __name__ == "__main__":
    root = jax.random.PRNGKey(0)
    kp, kx = jax.random.split(root)

    features = [8, 16, 32]
    in_feature = 4
    out_feature = 3

    model = UnetPallas(features, in_feature, out_feature, kp)

    x = jax.random.normal(kx, (2, in_feature, 16, 16), jnp.float32)  # NCHW
    out = model(x)
    out = jax.block_until_ready(out)
    assert out.shape == (2, out_feature, 16, 16), out.shape
    assert bool(jnp.all(jnp.isfinite(out)))
    print("KERNEL_OK")
</pallas_src>

<mosaic_0001>
module attributes {stable_mosaic.version = 11 : i64} {
  func.func @_conv_gemm_stats_kernel(%arg0: i32, %arg1: memref<8x36xbf16, #tpu.memory_space<vmem>>, %arg2: memref<36x256xbf16, #tpu.memory_space<vmem>>, %arg3: memref<8x256xbf16, #tpu.memory_space<vmem>>, %arg4: memref<8x1xf32, #tpu.memory_space<vmem>>, %arg5: memref<8x1xf32, #tpu.memory_space<vmem>>) attributes {dimension_semantics = [#tpu.dimension_semantics<arbitrary>], iteration_bounds = array<i64: 2>, scalar_prefetch = 0 : i64, scratch_operands = 0 : i64, tpu.core_type = #tpu.core_type<tc>, window_params = [{pipeline_mode = #tpu.pipeline_mode<synchronous>, transform_indices = @transform_0, window_bounds = array<i64: 8, 36>}, {transform_indices = @transform_1, window_bounds = array<i64: 36, 256>}, {transform_indices = @transform_2, window_bounds = array<i64: 8, 256>}, {pipeline_mode = #tpu.pipeline_mode<synchronous>, transform_indices = @transform_3, window_bounds = array<i64: 8, 1>}, {pipeline_mode = #tpu.pipeline_mode<synchronous>, transform_indices = @transform_4, window_bounds = array<i64: 8, 1>}]} {
    %c0_i32 = arith.constant 0 : i32
    %0 = arith.cmpi eq, %arg0, %c0_i32 : i32
    %1 = arith.extui %0 : i1 to i32
    %c0_i32_0 = arith.constant 0 : i32
    %2 = arith.cmpi ne, %1, %c0_i32_0 : i32
    scf.if %2 {
      %cst_16 = arith.constant 0.000000e+00 : f32
      %19 = vector.broadcast %cst_16 : f32 to vector<8x1xf32>
      %c0_17 = arith.constant 0 : index
      %c0_18 = arith.constant 0 : index
      %20 = vector.load %arg4[%c0_17, %c0_18] : memref<8x1xf32, #tpu.memory_space<vmem>>, vector<8x1xf32>
      tpu.vector_store %arg4[%c0_17, %c0_18], %19 {strides = array<i32>} : memref<8x1xf32, #tpu.memory_space<vmem>>, vector<8x1xf32>,
      %cst_19 = arith.constant 0.000000e+00 : f32
      %21 = vector.broadcast %cst_19 : f32 to vector<8x1xf32>
      %c0_20 = arith.constant 0 : index
      %c0_21 = arith.constant 0 : index
      %22 = vector.load %arg5[%c0_20, %c0_21] : memref<8x1xf32, #tpu.memory_space<vmem>>, vector<8x1xf32>
      tpu.vector_store %arg5[%c0_20, %c0_21], %21 {strides = array<i32>} : memref<8x1xf32, #tpu.memory_space<vmem>>, vector<8x1xf32>,
    } else {
    }
    %c0 = arith.constant 0 : index
    %c0_1 = arith.constant 0 : index
    %3 = vector.load %arg1[%c0, %c0_1] : memref<8x36xbf16, #tpu.memory_space<vmem>>, vector<8x36xbf16>
    %c0_2 = arith.constant 0 : index
    %c0_3 = arith.constant 0 : index
    %4 = vector.load %arg2[%c0_2, %c0_3] : memref<36x256xbf16, #tpu.memory_space<vmem>>, vector<36x256xbf16>
    %cst = arith.constant dense<0.000000e+00> : vector<8x256xf32>
    %5 = tpu.matmul %3, %4, %cst {dimension_numbers = #tpu.dot_dimension_numbers<[1], [0], [0], [1], [0, 0, 1, 1], [], []>} : vector<8x36xbf16>, vector<36x256xbf16>, vector<8x256xf32> -> vector<8x256xf32>
    %6 = arith.truncf %5 : vector<8x256xf32> to vector<8x256xbf16>
    %c0_4 = arith.constant 0 : index
    %c0_5 = arith.constant 0 : index
    %7 = vector.load %arg3[%c0_4, %c0_5] : memref<8x256xbf16, #tpu.memory_space<vmem>>, vector<8x256xbf16>
    tpu.vector_store %arg3[%c0_4, %c0_5], %6 {strides = array<i32>} : memref<8x256xbf16, #tpu.memory_space<vmem>>, vector<8x256xbf16>,
    %c0_6 = arith.constant 0 : index
    %c0_7 = arith.constant 0 : index
    %8 = vector.load %arg4[%c0_6, %c0_7] : memref<8x1xf32, #tpu.memory_space<vmem>>, vector<8x1xf32>
    %cst_8 = arith.constant dense<0.000000e+00> : vector<8xf32>
    %9 = vector.multi_reduction <add>, %5, %cst_8 [1] : vector<8x256xf32> to vector<8xf32>
    %10 = vector.shape_cast %9 : vector<8xf32> to vector<8x1xf32>
    %11 = arith.addf %8, %10 : vector<8x1xf32>
    %c0_9 = arith.constant 0 : index
    %c0_10 = arith.constant 0 : index
    %12 = vector.load %arg4[%c0_9, %c0_10] : memref<8x1xf32, #tpu.memory_space<vmem>>, vector<8x1xf32>
    tpu.vector_store %arg4[%c0_9, %c0_10], %11 {strides = array<i32>} : memref<8x1xf32, #tpu.memory_space<vmem>>, vector<8x1xf32>,
    %c0_11 = arith.constant 0 : index
    %c0_12 = arith.constant 0 : index
    %13 = vector.load %arg5[%c0_11, %c0_12] : memref<8x1xf32, #tpu.memory_space<vmem>>, vector<8x1xf32>
    %14 = arith.mulf %5, %5 : vector<8x256xf32>
    %cst_13 = arith.constant dense<0.000000e+00> : vector<8xf32>
    %15 = vector.multi_reduction <add>, %14, %cst_13 [1] : vector<8x256xf32> to vector<8xf32>
    %16 = vector.shape_cast %15 : vector<8xf32> to vector<8x1xf32>
    %17 = arith.addf %13, %16 : vector<8x1xf32>
    %c0_14 = arith.constant 0 : index
    %c0_15 = arith.constant 0 : index
    %18 = vector.load %arg5[%c0_14, %c0_15] : memref<8x1xf32, #tpu.memory_space<vmem>>, vector<8x1xf32>
    tpu.vector_store %arg5[%c0_14, %c0_15], %17 {strides = array<i32>} : memref<8x1xf32, #tpu.memory_space<vmem>>, vector<8x1xf32>,
    return
  }
  func.func @transform_0(%arg0: i32) -> (i32, i32) {
    %c0_i32 = arith.constant 0 : i32
    %c0_i32_0 = arith.constant 0 : i32
    %c0_i32_1 = arith.constant 0 : i32
    return %c0_i32, %c0_i32_0 : i32, i32
  }
  func.func @transform_1(%arg0: i32) -> (i32, i32) {
    %c0_i32 = arith.constant 0 : i32
    %c0_i32_0 = arith.constant 0 : i32
    return %c0_i32, %arg0 : i32, i32
  }
  func.func @transform_2(%arg0: i32) -> (i32, i32) {
    %c0_i32 = arith.constant 0 : i32
    %c0_i32_0 = arith.constant 0 : i32
    return %c0_i32, %arg0 : i32, i32
  }
  func.func @transform_3(%arg0: i32) -> (i32, i32) {
    %c0_i32 = arith.constant 0 : i32
    %c0_i32_0 = arith.constant 0 : i32
    %c0_i32_1 = arith.constant 0 : i32
    return %c0_i32, %c0_i32_0 : i32, i32
  }
  func.func @transform_4(%arg0: i32) -> (i32, i32) {
    %c0_i32 = arith.constant 0 : i32
    %c0_i32_0 = arith.constant 0 : i32
    %c0_i32_1 = arith.constant 0 : i32
    return %c0_i32, %c0_i32_0 : i32, i32
  }
}

</mosaic_0001>

<bundles_post_ra>
// kernel: tpu_custom_call.1
= control target key start
LH: loop header
LB: loop body
LE: loop exit
PB: predicated region body
PF: predicated region fallthrough
CT: control target
= control target key end

     0   :  { %s866_s0 = inlined_call_operand.hbm [shape: bf16[8,36], index: 0, kind: input, shape index: {}]   ;;  %s867_s1 = inlined_call_operand.hbm [shape: bf16[36,512], index: 1, kind: input, shape index: {}]   ;;  %s868_s2 = inlined_call_operand.hbm [shape: bf16[8,512], index: 2, kind: output, shape index: {0}]   ;;  %s869_s3 = inlined_call_operand.vmem [shape: f32[8,1], index: 3, kind: output, shape index: {1}]   ;;  %s870_s4 = inlined_call_operand.vmem [shape: f32[8,1], index: 4, kind: output, shape index: {2}]  }
   0x1   :  { %871 = sst [smem:[#allocation11_spill]] %s866_s0 }
   0x2   :  { %10 = vsyncpa [#allocation3], 0 }
   0x3   :  { %11 = vsyncpa [#allocation6], 0 }
   0x4   :  { %13 = vsyncpa [#allocation6 + $0x1], 0 }
   0x5   :  { %14 = vsyncpa [#allocation4], 0 }
   0x6   :  { %16 = vsyncpa [#allocation4 + $0x1], 0  ;;  %s698_s15 = smov 0   ;;  %s700_s16 = smov 0  }
   0x7   :  { %s702_s17 = smov 0   ;;  %s704_s18 = smov 0  }
   0x8 LB: > { %s719_s19 = sadd.s32 4294967295, %s666_s18   ;;  %s434_s20 = sadd.s32 4294967294, %s666_s18   ;;  %s666_s18 = sphi %s704_s18, %s884_s18   ;;  %s662_s17 = sphi %s702_s17, %s883_s17   ;;  %s658_s16 = sphi %s700_s16, %s882_s16   ;;  %s654_s15 = sphi %s698_s15, %s881_s15  }
   0x9   : > { %s723_s21 = sadd.s32 1, %s666_s18   ;;  %s50_s22 = sadd.s32 1, %s662_s17 }
   0xa   : > { %s47_s23 = ssub.s32 %s666_s18, %s723_s21  ;;  %p57_p0 = scmp.ne.s32.totalorder %s662_s17, %s658_s16 }
   0xb   : > { %p48_p1 = scmp.eq.s32.totalorder %s47_s23, 0  ;;  %p58_p2 = scmp.eq.s32.totalorder %s666_s18, 0 }
   0xc   : > { %p63_p3 = scmp.ne.s32.totalorder %s658_s16, %s654_s15  ;;  %p64_p4 = scmp.eq.s32.totalorder %s719_s19, 0 }
   0xd   : > { %s735_s24 = scalar_select %p48_p1, %s662_s17, %s50_s22  }
   0xe   : > { %p737_p5 = por %p58_p2, %p57_p0  ;;  %p743_p6 = por %p64_p4, %p63_p3 }
   0xf   : > { %p87_p7 = scmp.eq.s32.totalorder %s719_s19, 1  ;;  %p93_p8 = scmp.eq.s32.totalorder %s434_s20, 1 }
  0x10   : > { %p435_p9 = scmp.ge.s32.totalorder %s666_s18, 1  ;;  %p142_p10 = scmp.lt.s32.totalorder %s666_s18, 3 }
  0x11   : > { %p750_p11 = por %p87_p7, %p57_p0  ;;  %p754_p12 = por %p93_p8, %p63_p3 }
  0x12   : > { %p758_p13 = pnand %p435_p9, %p142_p10  ;;  %s877_s0 = sld [smem:[#allocation11_spill]] }
  0x13   : > { %s668_s7 = smov [#allocation2]   ;;  %p496_p7 = scmp.lt.s32.totalorder %s666_s18, 2 }
  0x14   : > { %p483_p0 = pneg %p758_p13  ;;  %s156_s8 = sshll.u32 %s668_s7, 4  ;;  %s157_s8 = int_to_ptr.vmem [resolvable:$true] %s156_s8 }
  0x15   : > { %s167_s9 = sand.u32 1, %s662_s17   ;;  %p775_p8 = pnand %p496_p7, %p737_p5 }
  0x16   : > { %p484_p3 = pnand %p483_p0, %p64_p4  ;;  %s473_s11 = smul.u32 40, %s167_s9 }
  0x17   : > { %s467_s12 = sshll.u32 %s666_s18, 3  ;;  %s168_s5 = scalar_lea.sflag [#allocation6], %s167_s9 }
  0x18   : > { %s154_s6 = sshll.u32 %s877_s0, 4  ;;  %s176_s20 = scalar_lea.hbm %s867_s1, %s467_s12  ;;  %s155_s6 = int_to_ptr.hbm [resolvable:$true] %s154_s6 }
  0x19   : > { %486 = dma.hbm_to_vmem [thread:$0]  (!%p484_p3), %s155_s6, 64, %s157_s8, [#allocation3]  }
  0x1a   : > { %s171_s22 = scalar_lea.vmem [#allocation5], %s473_s11  ;;  %s177_s30 = sshll.u32 %s176_s20, 4  ;;  %s178_s30 = int_to_ptr.hbm [resolvable:$true] %s177_s30 }
  0x1b   : > { %s179_s23 = sshll.u32 %s171_s22, 4  ;;  %s566_s7 = sshra.s32 %s178_s30, 4  ;;  %s180_s23 = int_to_ptr.vmem [resolvable:$true] %s179_s23  ;;  %s567_s7 = int_to_ptr.hbm [resolvable:$true] %s566_s7 }
  0x1c   : > { %s568_s25 = scalar_lea.hbm %s567_s7, 40  ;;  %p570_p9 = pneg %p775_p8 }
  0x1d   : > { %p569_p5 = scmp.ne.s32.totalorder %s567_s7, %s568_s25  ;;  %s573_s0 = scalar_lea.hbm %s867_s1, 80 }
  0x1e   : > { %p574_p3 = scmp.lt.s32.totalorder %s567_s7, %s867_s1  ;;  %p575_p7 = scmp.lt.s32.totalorder %s573_s0, %s568_s25 }
  0x1f   : > { %p571_p10 = pnand %p570_p9, %p569_p5 }
  0x20   : > { %p576_p2 = por %p575_p7, %p574_p3 }
  0x21   : > { %p572_p0 = pneg %p571_p10 }
  0x23   : > { %p577_p1 = pnand %p576_p2, %p572_p0 }
  0x25   : > { %580 = shalt.err (!%p577_p1)
}
  0x26   : > { %s669_s9 = smov 256   ;;  %s670_s11 = smov 128  }
  0x27   : > { %s671_s14 = smov 8   ;;  %191 = sbr.rel (%p758_p13) target bundleno = 332 (0x14c), region = 28 }
  0x28   : > { %490 = dma.hbm_to_vmem [thread:$0]  (!%p775_p8), %s178_s30, 640, %s180_s23, %s168_s5, %s669_s9, %s670_s11, %s671_s14  }
  0x2c   : > { %641 = dma.done.wait (%p64_p4), [#allocation3], 64  }
  0x2d   : > { %643 = vsyncadd (%p64_p4), [#allocation3], 4294967232  ;;  %s800_s0 = sand.u32 1, %s658_s16  }
  0x2e   : > { %s474_s20 = smul.u32 40, %s800_s0  ;;  %s199_s22 = scalar_lea.sflag [#allocation6], %s800_s0 }
  0x30   : > { %s202_s7 = scalar_lea.vmem [#allocation5], %s474_s20 }
  0x31   : > { %645 = dma.done.wait (%p743_p6), %s199_s22, 640  }
  0x32   : > { %647 = vsyncadd (%p743_p6), %s199_s22, 4294966656  ;;  %s442_s29 = sshll.u32 %s800_s0, 3  ;;  %p879_p4 = scmp.ne.s32.totalorder %s719_s19, 0 }
  0x33   : > { %s809_s10 = scalar_lea.vmem [#allocation7], %s442_s29 }
  0x34   : > { %234 = sbr.rel (%p879_p4) target bundleno = 60 (0x3c), region = 40 }
  0x39   : > { %vm235_vm0 = vcmask 7168   ;;  %v672_v0 = vmov 0.0  }
  0x3a   : > { %236 = vst.msk [vmem:[%s869_s3] sm:$0xff] %vm235_vm0, %v672_v0 }
  0x3b   : > { %237 = vst.msk [vmem:[%s870_s4] sm:$0xff] %vm235_vm0, %v672_v0 }
  0x3c PF: > { %v243_v1 = vld [vmem:[%s202_s7 + $0x20] sm:$0x33]  ;;  %vm273_vm1 = vcmask 1041408   ;;  %v454_v4 = vld [vmem:[%s202_s7 + $0x10] sm:$0xf]  ;;  %vm269_vm2 = vcmask 293888  }
  0x3d   : > { %v257_v2 = vunpack.c.l.b16 %v243_v1  ;;  %v258_v3 = vunpack.c.h.b16 %v243_v1  ;;  %v471_v7 = vld [vmem:[%s202_s7 + $0x14] sm:$0xf0]  ;;  %v470_v8 = vld [vmem:[%s202_s7 + $0x14] sm:$0xf]  ;;  %v456_v9 = vld [vmem:[%s202_s7 + $0x18] sm:$0xf0] }
  0x3e   : > { %v455_v12 = vor.u32 %v471_v7, %v454_v4  ;;  %v459_v13 = vor.u32 %v470_v8, %v456_v9  ;;  %v446_v14 = vld [vmem:[%s202_s7] sm:$0xf]  ;;  %v469_v15 = vld [vmem:[%s202_s7 + $0x4] sm:$0xf0]  ;;  %v468_v16 = vld [vmem:[%s202_s7 + $0x4] sm:$0xf] }
  0x3f   : > { %v263_v5 = vpack.c.b16 %v257_v2, %v257_v2  ;;  %v264_v6 = vpack.c.b16 %v258_v3, %v258_v3  ;;  %v448_v17 = vld [vmem:[%s202_s7 + $0x8] sm:$0xf0]  ;;  %v447_v18 = vor.u32 %v469_v15, %v446_v14  ;;  %v238_v20 = vld [vmem:[#allocation2] sm:$0xf]  ;;  %s472_s26 = sshll.u32 %s719_s19, 3  ;;  %s337_s12 = sshll.u32 %s809_s10, 4  ;;  %s338_s12 = int_to_ptr.vmem [resolvable:$true] %s337_s12 }
  0x40   : > { %v451_v19 = vor.u32 %v468_v16, %v448_v17  ;;  %s335_s13 = scalar_lea.hbm %s868_s2, %s472_s26  ;;  %s324_s11 = scalar_lea.sflag [#allocation4], %s800_s0 }
  0x41   : > { %v275_v10 = vsel %vm273_vm1, %v263_v5, 0  ;;  %v278_v11 = vsel %vm273_vm1, %v264_v6, 0  ;;  %s339_s9 = sshll.u32 %s335_s13, 4  ;;  %s616_s7 = scalar_lea.hbm %s868_s2, 16  ;;  %s340_s9 = int_to_ptr.hbm [resolvable:$true] %s339_s9 }
  0x42   : > { %285 = vmatpush.bf16.msra.mxu0 %v275_v10  ;;  %298 = vmatpush.bf16.msra.mxu1 %v278_v11  ;;  %s610_s14 = sshra.s32 %s340_s9, 4  ;;  %s611_s14 = int_to_ptr.hbm [resolvable:$true] %s610_s14 }
  0x43   : > { %s612_s20 = scalar_lea.hbm %s611_s14, 8  ;;  %p617_p2 = scmp.lt.s32.totalorder %s611_s14, %s868_s2 }
  0x44   : > { %p613_p6 = scmp.ne.s32.totalorder %s611_s14, %s612_s20  ;;  %p618_p8 = scmp.lt.s32.totalorder %s616_s7, %s612_s20 }
  0x46   : > { %286 = vmatpush.bf16.msra.mxu0 %v455_v12  ;;  %299 = vmatpush.bf16.msra.mxu1 %v459_v13  ;;  %p614_p13 = pnand %p613_p6, %p750_p11  ;;  %p619_p5 = por %p618_p8, %p617_p2 }
  0x48   : > { %p615_p1 = pneg %p614_p13 }
  0x4a   : > { %287 = vmatpush.bf16.msra.mxu0 %v447_v18  ;;  %300 = vmatpush.bf16.msra.mxu1 %v451_v19  ;;  %p620_p9 = pnand %p619_p5, %p615_p1 }
  0x4d   : > { %460 = vmatmul.msk.bf16.vlgmr.msra.gmra.mxu0 %vm269_vm2, %v238_v20  ;;  %461 = vmatmul.msk.bf16.vlgmr.msra.gmra.mxu1 %vm269_vm2, %v238_v20 }
  0xca   : > { %v289_v21 = vpop.f32.mrf.mxu0  ;;  %v302_v22 = vpop.f32.mrf.mxu1 }
  0xcb   : > { %v306_v23 = vpack.c.bf16 %v302_v22, %v289_v21  ;;  %v309_v24 = vadd.f32 %v302_v22, %v289_v21 }
  0xcd   : > { %307 = vst [vmem:[%s809_s10] sm:$0xff] %v306_v23  ;;  %310 = vadd.xlane.f32.xlu0 %v309_v24 }
  0xce   : > { %623 = shalt.err (!%p620_p9)
}
  0xcf   : > { %481 = dma.vmem_to_hbm [thread:$0]  (%p750_p11), %s338_s12, 128, %s340_s9, %s324_s11   ;;  %v316_v25 = vmul.f32 %v289_v21, %v289_v21  ;;  %v317_v26 = vmul.f32 %v302_v22, %v302_v22  ;;  %v308_v30 = vld [vmem:[%s869_s3] sm:$0xff]  ;;  %vm313_vm3 = vcmask 7168  }
  0xd0   : > { %v315_v33 = vld [vmem:[%s870_s4] sm:$0xff] }
  0xd1   : > { %v318_v29 = vadd.f32 %v317_v26, %v316_v25 }
  0xd2   : > { %v291_v27 = vpop.f32.mrf.mxu0  ;;  %v304_v28 = vpop.f32.mrf.mxu1 }
  0xd5   : > { %319 = vadd.xlane.f32.xlu0 %v318_v29 }
 0x140   : > { %v311_v31 = vpop.xlane.xlu0 %310 }
 0x141   : > { %v312_v32 = vadd.f32 %v311_v31, %v308_v30 }
 0x143   : > { %314 = vst.msk [vmem:[%s869_s3] sm:$0xff] %vm313_vm3, %v312_v32 }
 0x148   : > { %v320_v34 = vpop.xlane.xlu0 %319 }
 0x149   : > { %v321_v35 = vadd.f32 %v320_v34, %v315_v33 }
 0x14b   : > { %322 = vst.msk [vmem:[%s870_s4] sm:$0xff] %vm313_vm3, %v321_v35 }
 0x14c PF: > { %s363_s8 = sand.u32 1, %s654_s15   ;;  %p880_p11 = scmp.ge.s32.totalorder %s666_s18, 2 }
 0x14d   : > { %s364_s13 = scalar_lea.sflag [#allocation4], %s363_s8 }
 0x14e   : > { %p492_p10 = pnand %p880_p11, %p754_p12 }
 0x150   : > { %p493_p0 = pneg %p492_p10 }
 0x152   : > { %649 = dma.done.wait (%p493_p0), %s364_s13, 128  }
 0x153   : > { %651 = vsyncadd (%p493_p0), %s364_s13, 4294967168  ;;  %p19_p3 = scmp.ge.s32.totalorder %s723_s21, 4   ;;  %s881_s15 = smov %s658_s16 }
 0x154   : > { %s882_s16 = smov %s662_s17  ;;  %s883_s17 = smov %s735_s24 }
 0x155   : > { %s884_s18 = smov %s723_s21  ;;  %21 = sbr.rel (!%p19_p3) target bundleno = 8 (0x8), region = 98 }
 0x15a   :  { %370 = vsyncpa [#allocation3], 1 }
 0x15b   :  { %372 = vsyncpa [#allocation3 + $0x1], 1 }
 0x15c   :  { %373 = vsyncpa [#allocation6], 1 }
 0x15d   :  { %375 = vsyncpa [#allocation6 + $0x1], 1 }
 0x15e   :  { %376 = vsyncpa [#allocation4], 1 }
 0x15f   :  { %378 = vsyncpa [#allocation4 + $0x1], 1 }

</bundles_post_ra>
